<compile_context>
chip_gen: v7x
topology: tpu7x:2x2x1
jax: 0.10.0
libtpu: 0.0.40
codegen_flags: <defaults>
</compile_context>

<pallas_src>
import numpy as np
import jax
import jax.numpy as jnp
from jax.experimental import pallas as pl
from jax.experimental.pallas import tpu as pltpu

LOG_STD_MAX = 2.0
LOG_STD_MIN = -20.0
_LOG_2PI = float(np.log(2.0 * np.pi))
_LOG_2 = float(np.log(2.0))


def _round_up(n, m):
    return ((n + m - 1) // m) * m


def squashed_gaussian_kernel(x_ref, w_ref, b_ref, noise_ref, act_ref, logp_ref):
    A = noise_ref.shape[-1]
    Ap = w_ref.shape[-1] // 2          # lane-aligned head width (multiple of 128)

    # Fused mean / log_std heads: one MXU matmul, bf16 inputs, f32 accumulation.
    y = jnp.dot(x_ref[...], w_ref[...], preferred_element_type=jnp.float32)
    y = y + b_ref[...]                                      # bias kept in f32

    mean = y[:, :A]                                         # lanes [0, A)  of tile 0
    logstd = jnp.clip(y[:, Ap:Ap + A], LOG_STD_MIN, LOG_STD_MAX)  # lanes [0, A) of tile 1
    std = jnp.exp(logstd)

    # rsample: a = mean + std * eps   (eps == 0  =>  deterministic mode)
    eps = noise_ref[...].astype(jnp.float32)
    a = mean + std * eps

    # tanh + squash correction sharing one EUP exp; exact reciprocal (HBM-bound,
    # the divide is free and keeps tanh at full f32 accuracy).
    abs_a = jnp.abs(a)
    e2 = jnp.exp(-2.0 * abs_a)                              # in (0, 1], never overflows
    t = (1.0 - e2) / (1.0 + e2)
    ta = jnp.where(a >= 0.0, t, -t)                         # tanh(a)

    # log-prob: -(a-mean)^2/(2 std^2) - logstd - 0.5*log(2*pi)  == -0.5*eps^2 - ...
    # squash correction: 2*(log2 - a - softplus(-2a)) == 2*(log2 - |a| - log1p(e2))
    # Additive constants folded into one scalar applied after the lane reduce.
    per = -0.5 * (eps * eps) - logstd + 2.0 * (abs_a + jnp.log1p(e2))
    logp = jnp.sum(per, axis=-1, keepdims=True) - float(A) * (0.5 * _LOG_2PI + 2.0 * _LOG_2)

    act_ref[...] = ta.astype(act_ref.dtype)
    logp_ref[...] = logp.astype(logp_ref.dtype)


def squashed_gaussian_forward(x, w_mean, b_mean, w_logstd, b_logstd, noise,
                              *, block_b=4096, stream_dtype=jnp.bfloat16):
    """Returns (action, clipped_action, logp_action, entropy_dist).

    Pass noise == zeros to emulate deterministic=True.  x / noise / weights are
    streamed in `stream_dtype` (bf16 by default): if the caller already holds
    bf16 features the casts are no-ops; math is f32 inside the kernel.
    """
    B, D = x.shape
    A = w_mean.shape[1]
    Ap = _round_up(A, 128)                                  # lane-align each head

    sbytes = jnp.dtype(stream_dtype).itemsize

    # Fused, lane-aligned weights / bias:  [mean head | pad | log_std head | pad]
    w = jnp.zeros((D, 2 * Ap), dtype=stream_dtype)
    w = w.at[:, :A].set(w_mean.astype(stream_dtype))
    w = w.at[:, Ap:Ap + A].set(w_logstd.astype(stream_dtype))
    b = jnp.zeros((1, 2 * Ap), dtype=jnp.float32)
    b = b.at[:, :A].set(jnp.reshape(b_mean, (1, A)).astype(jnp.float32))
    b = b.at[:, Ap:Ap + A].set(jnp.reshape(b_logstd, (1, A)).astype(jnp.float32))

    x_s = x.astype(stream_dtype)
    n_s = noise.astype(stream_dtype)

    # --- batch-tile sizing: lane-padding-aware VMEM budget ---------------------
    lane_pad = lambda n: _round_up(max(int(n), 1), 128)
    # Double-buffered, tb-dependent blocks (bytes per batch row):
    per_row = 2 * (lane_pad(D) * sbytes        # x tile
                   + lane_pad(A) * sbytes      # noise tile
                   + lane_pad(A) * 4           # action output tile
                   + lane_pad(1) * 4)          # logp output tile
    # Resident (constant index_map) blocks, counted double-buffered to be safe:
    fixed = 2 * (_round_up(D, 8) * (2 * Ap) * sbytes + 8 * (2 * Ap) * 4)
    budget = 40 * 1024 * 1024                  # under the 48 MiB scoped limit
    tb_budget = max(8, ((budget - fixed) // per_row) // 8 * 8) if budget > fixed else 8

    # >= 2 grid steps whenever B >= 16 so v7x's two TensorCores both get work.
    tb = _round_up(B, 8) if B < 16 else _round_up(pl.cdiv(B, 2), 8)
    tb = max(8, min(tb, block_b, tb_budget))
    grid = (pl.cdiv(B, tb),)                   # ragged last tile handled by Pallas

    cost = pl.CostEstimate(
        flops=2 * B * D * (2 * Ap),
        transcendentals=3 * B * A,             # exp(logstd), exp(-2|a|), log1p
        bytes_accessed=(B * D * sbytes + B * A * sbytes + D * 2 * Ap * sbytes
                        + 2 * Ap * 4 + B * A * 4 + B * 4),
    )

    action, logp = pl.pallas_call(
        squashed_gaussian_kernel,
        out_shape=(jax.ShapeDtypeStruct((B, A), jnp.float32),
                   jax.ShapeDtypeStruct((B, 1), jnp.float32)),
        grid_spec=pltpu.PrefetchScalarGridSpec(
            num_scalar_prefetch=0,
            grid=grid,
            in_specs=[
                pl.BlockSpec((tb, D), lambda i: (i, 0)),          # x tile (streamed)
                pl.BlockSpec((D, 2 * Ap), lambda i: (0, 0)),      # fused weights (resident)
                pl.BlockSpec((1, 2 * Ap), lambda i: (0, 0)),      # fused bias (resident)
                pl.BlockSpec((tb, A), lambda i: (i, 0)),          # noise tile (streamed)
            ],
            out_specs=[
                pl.BlockSpec((tb, A), lambda i: (i, 0)),          # tanh(action)
                pl.BlockSpec((tb, 1), lambda i: (i, 0)),          # logp
            ],
        ),
        compiler_params=pltpu.CompilerParams(
            dimension_semantics=("parallel",),                    # megacore-shardable
            vmem_limit_bytes=48 * 1024 * 1024,                    # safe on v5e/v6e/v7x
        ),
        cost_estimate=cost,
    )(x_s, w, b, n_s)

    entropy = -jnp.mean(logp)                                     # tiny wrapper-side reduce
    # Reference module: `action = clipped_action = torch.tanh(action)` — same tensor.
    return action, action, logp, entropy


def _reference_forward(x, w_mean, b_mean, w_logstd, b_logstd, noise):
    """Pure-JAX reference mirroring the PyTorch module."""
    mean = x @ w_mean + b_mean
    logstd = jnp.clip(x @ w_logstd + b_logstd, LOG_STD_MIN, LOG_STD_MAX)
    std = jnp.exp(logstd)
    a = mean + std * noise
    lp = -((a - mean) ** 2) / (2.0 * std * std) - logstd - 0.5 * _LOG_2PI
    logp = jnp.sum(lp, axis=-1, keepdims=True)
    logp = logp - jnp.sum(2.0 * (_LOG_2 - a - jax.nn.softplus(-2.0 * a)),
                          axis=-1, keepdims=True)
    ta = jnp.tanh(a)
    return ta, ta, logp, -jnp.mean(logp)


def orthogonal_init(rng, shape):
    # Deterministic orthogonal init (mimics nn.init.orthogonal_), bias = 0.
    a = rng.standard_normal(size=shape).astype(np.float32)
    q, r = np.linalg.qr(a if shape[0] >= shape[1] else a.T)
    q = q * np.sign(np.diag(r))
    if shape[0] < shape[1]:
        q = q.T
    return jnp.asarray(q[: shape[0], : shape[1]], dtype=jnp.float32)


if __name__ == "__main__":
    B, D, A = 8, 32, 8  # batch, num_inputs, num_outputs

    key = jax.random.PRNGKey(0)
    kx, kn = jax.random.split(key)
    x = jax.random.normal(kx, (B, D), dtype=jnp.float32)

    # Deterministic parameters (orthogonal weights, zero biases).
    np_rng = np.random.default_rng(0)
    w_mean = orthogonal_init(np_rng, (D, A))      # stored as [in, out]
    b_mean = jnp.zeros((1, A), dtype=jnp.float32)
    w_logstd = orthogonal_init(np_rng, (D, A))
    b_logstd = jnp.zeros((1, A), dtype=jnp.float32)

    # rsample noise; pass zeros instead to emulate deterministic=True.
    noise = jax.random.normal(kn, (B, A), dtype=jnp.float32)

    action, clipped_action, logp_action, entropy_dist = squashed_gaussian_forward(
        x, w_mean, b_mean, w_logstd, b_logstd, noise
    )
    jax.block_until_ready((action, clipped_action, logp_action, entropy_dist))

    assert action.shape == (B, A)
    assert clipped_action.shape == (B, A)
    assert logp_action.shape == (B, 1)
    assert entropy_dist.shape == ()

    # Numerical check: compare against a pure-JAX reference run on the SAME
    # bf16-quantized inputs, so only kernel math error remains (tight tolerance
    # now that the exact reciprocal is used for tanh).
    q = lambda v: v.astype(jnp.bfloat16).astype(jnp.float32)
    ra, _, rlp, rent = _reference_forward(q(x), q(w_mean), b_mean, q(w_logstd),
                                          b_logstd, q(noise))
    np.testing.assert_allclose(np.asarray(action), np.asarray(ra), rtol=1e-3, atol=1e-3)
    np.testing.assert_allclose(np.asarray(logp_action), np.asarray(rlp), rtol=1e-3, atol=1e-3)
    np.testing.assert_allclose(float(entropy_dist), float(rent), rtol=1e-3, atol=1e-3)

    print("KERNEL_OK")
</pallas_src>

<mosaic_0001>
module attributes {stable_mosaic.version = 11 : i64} {
  func.func @squashed_gaussian_kernel(%arg0: i32, %arg1: memref<8x32xbf16, #tpu.memory_space<vmem>>, %arg2: memref<32x256xbf16, #tpu.memory_space<vmem>>, %arg3: memref<1x256xf32, #tpu.memory_space<vmem>>, %arg4: memref<8x8xbf16, #tpu.memory_space<vmem>>, %arg5: memref<8x8xf32, #tpu.memory_space<vmem>>, %arg6: memref<8x1xf32, #tpu.memory_space<vmem>>) attributes {dimension_semantics = [#tpu.dimension_semantics<parallel>], iteration_bounds = array<i64: 1>, scalar_prefetch = 0 : i64, scratch_operands = 0 : i64, tpu.core_type = #tpu.core_type<tc>, window_params = [{transform_indices = @transform_0, window_bounds = array<i64: 8, 32>}, {pipeline_mode = #tpu.pipeline_mode<synchronous>, transform_indices = @transform_1, window_bounds = array<i64: 32, 256>}, {pipeline_mode = #tpu.pipeline_mode<synchronous>, transform_indices = @transform_2, window_bounds = array<i64: 1, 256>}, {transform_indices = @transform_3, window_bounds = array<i64: 8, 8>}, {transform_indices = @transform_4, window_bounds = array<i64: 8, 8>}, {transform_indices = @transform_5, window_bounds = array<i64: 8, 1>}]} {
    %c0 = arith.constant 0 : index
    %c0_0 = arith.constant 0 : index
    %0 = vector.load %arg1[%c0, %c0_0] : memref<8x32xbf16, #tpu.memory_space<vmem>>, vector<8x32xbf16>
    %c0_1 = arith.constant 0 : index
    %c0_2 = arith.constant 0 : index
    %1 = vector.load %arg2[%c0_1, %c0_2] : memref<32x256xbf16, #tpu.memory_space<vmem>>, vector<32x256xbf16>
    %cst = arith.constant dense<0.000000e+00> : vector<8x256xf32>
    %2 = tpu.matmul %0, %1, %cst {dimension_numbers = #tpu.dot_dimension_numbers<[1], [0], [0], [1], [0, 0, 1, 1], [], []>} : vector<8x32xbf16>, vector<32x256xbf16>, vector<8x256xf32> -> vector<8x256xf32>
    %c0_3 = arith.constant 0 : index
    %c0_4 = arith.constant 0 : index
    %3 = vector.load %arg3[%c0_3, %c0_4] : memref<1x256xf32, #tpu.memory_space<vmem>>, vector<1x256xf32>
    %4 = vector.broadcast %3 : vector<1x256xf32> to vector<8x256xf32>
    %5 = arith.addf %2, %4 : vector<8x256xf32>
    %6 = vector.extract_strided_slice %5 {offsets = [0, 0], sizes = [8, 8], strides = [1, 1]} : vector<8x256xf32> to vector<8x8xf32>
    %7 = vector.extract_strided_slice %5 {offsets = [0, 128], sizes = [8, 8], strides = [1, 1]} : vector<8x256xf32> to vector<8x8xf32>
    %cst_5 = arith.constant -2.000000e+01 : f32
    %cst_6 = arith.constant 2.000000e+00 : f32
    %8 = vector.broadcast %cst_5 : f32 to vector<8x8xf32>
    %9 = arith.maximumf %8, %7 : vector<8x8xf32>
    %10 = vector.broadcast %cst_6 : f32 to vector<8x8xf32>
    %11 = arith.minimumf %10, %9 : vector<8x8xf32>
    %12 = math.exp %11 : vector<8x8xf32>
    %c0_7 = arith.constant 0 : index
    %c0_8 = arith.constant 0 : index
    %13 = vector.load %arg4[%c0_7, %c0_8] : memref<8x8xbf16, #tpu.memory_space<vmem>>, vector<8x8xbf16>
    %14 = arith.extf %13 : vector<8x8xbf16> to vector<8x8xf32>
    %15 = arith.mulf %12, %14 : vector<8x8xf32>
    %16 = arith.addf %6, %15 : vector<8x8xf32>
    %17 = math.absf %16 : vector<8x8xf32>
    %cst_9 = arith.constant -2.000000e+00 : f32
    %18 = vector.broadcast %cst_9 : f32 to vector<8x8xf32>
    %19 = arith.mulf %18, %17 : vector<8x8xf32>
    %20 = math.exp %19 : vector<8x8xf32>
    %cst_10 = arith.constant 1.000000e+00 : f32
    %21 = vector.broadcast %cst_10 : f32 to vector<8x8xf32>
    %22 = arith.subf %21, %20 : vector<8x8xf32>
    %cst_11 = arith.constant 1.000000e+00 : f32
    %23 = vector.broadcast %cst_11 : f32 to vector<8x8xf32>
    %24 = arith.addf %23, %20 : vector<8x8xf32>
    %25 = arith.divf %22, %24 : vector<8x8xf32>
    %cst_12 = arith.constant 0.000000e+00 : f32
    %26 = vector.broadcast %cst_12 : f32 to vector<8x8xf32>
    %27 = arith.cmpf oge, %16, %26 : vector<8x8xf32>
    %cst_13 = arith.constant 0.000000e+00 : f32
    %28 = vector.broadcast %cst_13 : f32 to vector<8x8xf32>
    %29 = arith.subf %28, %25 : vector<8x8xf32>
    %30 = arith.select %27, %25, %29 : vector<8x8xi1>, vector<8x8xf32>
    %31 = arith.mulf %14, %14 : vector<8x8xf32>
    %cst_14 = arith.constant -5.000000e-01 : f32
    %32 = vector.broadcast %cst_14 : f32 to vector<8x8xf32>
    %33 = arith.mulf %32, %31 : vector<8x8xf32>
    %34 = arith.subf %33, %11 : vector<8x8xf32>
    %35 = math.log1p %20 : vector<8x8xf32>
    %36 = arith.addf %17, %35 : vector<8x8xf32>
    %cst_15 = arith.constant 2.000000e+00 : f32
    %37 = vector.broadcast %cst_15 : f32 to vector<8x8xf32>
    %38 = arith.mulf %37, %36 : vector<8x8xf32>
    %39 = arith.addf %34, %38 : vector<8x8xf32>
    %cst_16 = arith.constant dense<0.000000e+00> : vector<8xf32>
    %40 = vector.multi_reduction <add>, %39, %cst_16 [1] : vector<8x8xf32> to vector<8xf32>
    %41 = vector.shape_cast %40 : vector<8xf32> to vector<8x1xf32>
    %cst_17 = arith.constant 18.441864 : f32
    %42 = vector.broadcast %cst_17 : f32 to vector<8x1xf32>
    %43 = arith.subf %41, %42 : vector<8x1xf32>
    %c0_18 = arith.constant 0 : index
    %c0_19 = arith.constant 0 : index
    %44 = vector.load %arg5[%c0_18, %c0_19] : memref<8x8xf32, #tpu.memory_space<vmem>>, vector<8x8xf32>
    tpu.vector_store %arg5[%c0_18, %c0_19], %30 {strides = array<i32>} : memref<8x8xf32, #tpu.memory_space<vmem>>, vector<8x8xf32>,
    %c0_20 = arith.constant 0 : index
    %c0_21 = arith.constant 0 : index
    %45 = vector.load %arg6[%c0_20, %c0_21] : memref<8x1xf32, #tpu.memory_space<vmem>>, vector<8x1xf32>
    tpu.vector_store %arg6[%c0_20, %c0_21], %43 {strides = array<i32>} : memref<8x1xf32, #tpu.memory_space<vmem>>, vector<8x1xf32>,
    return
  }
  func.func @transform_0(%arg0: i32) -> (i32, i32) {
    %c0_i32 = arith.constant 0 : i32
    %c0_i32_0 = arith.constant 0 : i32
    return %arg0, %c0_i32 : i32, i32
  }
  func.func @transform_1(%arg0: i32) -> (i32, i32) {
    %c0_i32 = arith.constant 0 : i32
    %c0_i32_0 = arith.constant 0 : i32
    %c0_i32_1 = arith.constant 0 : i32
    return %c0_i32, %c0_i32_0 : i32, i32
  }
  func.func @transform_2(%arg0: i32) -> (i32, i32) {
    %c0_i32 = arith.constant 0 : i32
    %c0_i32_0 = arith.constant 0 : i32
    %c0_i32_1 = arith.constant 0 : i32
    return %c0_i32, %c0_i32_0 : i32, i32
  }
  func.func @transform_3(%arg0: i32) -> (i32, i32) {
    %c0_i32 = arith.constant 0 : i32
    %c0_i32_0 = arith.constant 0 : i32
    return %arg0, %c0_i32 : i32, i32
  }
  func.func @transform_4(%arg0: i32) -> (i32, i32) {
    %c0_i32 = arith.constant 0 : i32
    %c0_i32_0 = arith.constant 0 : i32
    return %arg0, %c0_i32 : i32, i32
  }
  func.func @transform_5(%arg0: i32) -> (i32, i32) {
    %c0_i32 = arith.constant 0 : i32
    %c0_i32_0 = arith.constant 0 : i32
    return %arg0, %c0_i32 : i32, i32
  }
}

</mosaic_0001>

<bundles_post_ra>
// kernel: tpu_custom_call.1
= control target key start
LH: loop header
LB: loop body
LE: loop exit
PB: predicated region body
PF: predicated region fallthrough
CT: control target
= control target key end

     0   :  { %11 = vsyncpa [#allocation3], 0  ;;  %s377_s0 = inlined_call_operand.hbm [shape: bf16[8,32], index: 0, kind: input, shape index: {}]   ;;  %s378_s1 = inlined_call_operand.hbm [shape: bf16[32,256], index: 1, kind: input, shape index: {}]   ;;  %s379_s2 = inlined_call_operand.vmem [shape: f32[1,256], index: 2, kind: input, shape index: {}]   ;;  %s380_s3 = inlined_call_operand.vmem [shape: bf16[8,8], index: 3, kind: input, shape index: {}]   ;;  %s381_s4 = inlined_call_operand.hbm [shape: f32[8,8], index: 4, kind: output, shape index: {0}]   ;;  %s382_s5 = inlined_call_operand.vmem [shape: f32[8,1], index: 5, kind: output, shape index: {1}]  }
   0x1   :  { %12 = vsyncpa [#allocation6], 0 }
   0x2   :  { %13 = vsyncpa [#allocation4], 0  ;;  %s289_s18 = smov [#allocation2]   ;;  %s290_s20 = smov [#allocation5]  }
   0x3   :  { %s20_s19 = sshll.u32 %s289_s18, 4  ;;  %s29_s21 = sshll.u32 %s290_s20, 4  ;;  %s21_s19 = int_to_ptr.vmem [resolvable:$true] %s20_s19  ;;  %s325_s21 = int_to_ptr.vmem [resolvable:$true] %s29_s21 }
   0x4   :  { %s217_s24 = scalar_lea.hbm %s377_s0, 64 }
   0x5   :  { %p218_p0 = scmp.ne.s32.totalorder %s377_s0, %s217_s24  ;;  %p221_p1 = scmp.lt.u32.totalorder %s217_s24, %s377_s0 }
   0x7   :  { %p223_p2 = pnand %p221_p1, %p218_p0 }
   0x9   :  { %226 = shalt.err (!%p223_p2)
}
   0xa   :  { %s227_s29 = scalar_lea.vmem %s21_s19, 64  ;;  %p232_p4 = scmp.lt.s32.totalorder %s21_s19, %s21_s19 }
   0xb   :  { %p228_p3 = scmp.ne.s32.totalorder %s21_s19, %s227_s29  ;;  %p233_p5 = scmp.lt.s32.totalorder %s227_s29, %s227_s29 }
   0xd   :  { %p234_p6 = por %p233_p5, %p232_p4 }
   0xf   :  { %p235_p7 = pnand %p234_p6, %p228_p3 }
  0x11   :  { %238 = shalt.err (!%p235_p7)
}
  0x12   :  { %23 = dma.hbm_to_vmem [thread:$0]  %s377_s0, 64, %s21_s19, [#allocation3]  }
  0x13   :  { %s239_s9 = scalar_lea.hbm %s378_s1, 512 }
  0x14   :  { %p240_p8 = scmp.ne.s32.totalorder %s378_s1, %s239_s9  ;;  %p243_p9 = scmp.lt.u32.totalorder %s239_s9, %s378_s1 }
  0x16   :  { %p245_p10 = pnand %p243_p9, %p240_p8 }
  0x18   :  { %248 = shalt.err (!%p245_p10)
}
  0x19   :  { %s249_s14 = scalar_lea.vmem %s325_s21, 512  ;;  %p254_p12 = scmp.lt.s32.totalorder %s325_s21, %s325_s21 }
  0x1a   :  { %p250_p11 = scmp.ne.s32.totalorder %s325_s21, %s249_s14  ;;  %p255_p13 = scmp.lt.s32.totalorder %s249_s14, %s249_s14 }
  0x1c   :  { %p256_p0 = por %p255_p13, %p254_p12 }
  0x1e   :  { %p257_p1 = pnand %p256_p0, %p250_p11 }
  0x20   :  { %260 = shalt.err (!%p257_p1)
}
  0x21   :  { %s291_s0 = smov 128   ;;  %s292_s15 = smov 8  }
  0x22   :  { %35 = dma.hbm_to_vmem [thread:$0]  %s378_s1, 512, %s325_s21, [#allocation6], %s291_s0, %s291_s0, %s292_s15  }
  0x23   :  { %283 = dma.done.wait [#allocation3], 64  }
  0x24   :  { %284 = vsyncadd [#allocation3], 4294967232 }
  0x25   :  { %285 = dma.done.wait [#allocation6], 512  }
  0x26   :  { %286 = vsyncadd [#allocation6], 4294966784  ;;  %v293_v0 = vmov 0   ;;  %v203_v1 = vld [vmem:[#allocation5 + $0x4] ss:$8 sps:$4 sm:$0xff]   ;;  %vm84_vm0 = vcmask 261120   ;;  %v54_v6 = vlaneseq }
  0x27   :  { %120 = vmatprep.mubr.bf16.mxu0 %v293_v0  ;;  %v205_v2 = vld [vmem:[#allocation5] ss:$8 sps:$4 sm:$0xff]   ;;  %88 = vmatprep.subr.bf16.mxu0 %v203_v1  ;;  %v206_v3 = vld [vmem:[#allocation5 + $0x14] ss:$8 sps:$4 sm:$0xff]   ;;  %v208_v4 = vld [vmem:[#allocation5 + $0x10] ss:$8 sps:$4 sm:$0xff]  }
  0x28   :  { %89 = vmatpush1.bf16.msra.mxu0 %v205_v2  ;;  %v47_v5 = vld [vmem:[#allocation2] sm:$0xf]  ;;  %v55_v7 = vshrl.u32 %v54_v6, 7  ;;  %vm163_vm2 = vcmask 64512  }
  0x29   :  { %90 = vmatprep.subr.bf16.mxu0 %v206_v3  ;;  %v52_v9 = vld [vmem:[%s379_s2] sm:$0x3]  ;;  %s294_s2 = smov [#allocation7]  }
  0x2a   :  { %v60_v8 = vsub.s32 1, %v55_v7  ;;  %v56_v19 = vsub.s32 0, %v55_v7  ;;  %v133_v20 = vld [vmem:[%s380_s3] sm:$0xf]  ;;  %s177_s3 = sshll.u32 %s294_s2, 4  ;;  %s178_s3 = int_to_ptr.vmem [resolvable:$true] %s177_s3 }
  0x2b   :  { %v134_v22 = vunpack.c.l.bf16 %v133_v20  ;;  %s261_s21 = scalar_lea.vmem %s178_s3, 128  ;;  %p266_p3 = scmp.lt.s32.totalorder %s178_s3, %s178_s3 }
  0x2c   :  { %91 = vmatpush1.bf16.msra.mxu0 %v208_v4  ;;  %v61_v10 = vrot.slane %v52_v9, %v60_v8  ;;  %v57_v21 = vrot.slane %v52_v9, %v56_v19  ;;  %p262_p2 = scmp.ne.s32.totalorder %s178_s3, %s261_s21  ;;  %p267_p4 = scmp.lt.s32.totalorder %s261_s21, %s261_s21 }
  0x2d   :  { %v148_v34 = vmul.f32 %v134_v22, %v134_v22 }
  0x2e   :  { %p268_p5 = por %p267_p4, %p266_p3 }
  0x2f   :  { %195 = vmatmul.mubr.msk.bf16.vlgmr.msra.gmra.mrb[0].mxu0 %vm84_vm0, %v47_v5  ;;  %v149_v42 = vmul.f32 -0.5, %v148_v34 }
  0x30   :  { %p269_p6 = pnand %p268_p5, %p262_p2 }
 0x102   :  { %v122_v11 = vpop.f32.mrb[0].mxu0 }
 0x103   :  { %v124_v12 = vpop.f32.mrb[1].mxu0  ;;  %v123_v24 = vadd.f32 %v122_v11, %v57_v21 }
 0x104   :  { %v125_v13 = vadd.f32 %v124_v12, %v61_v10  ;;  %v126_v14 = vpop.f32.mrb[2].mxu0 }
 0x105   :  { %v127_v15 = vpop.f32.mrb[3].mxu0 }
 0x106   :  { %v129_v16 = vmax.f32 %v125_v13, -20.0 }
 0x108   :  { %v130_v17 = vmin.f32 %v129_v16, 2.0 }
 0x10a   :  { %v131_v18 = vmul.f32 1.442695, %v130_v17  ;;  %v150_v47 = vsub.f32 %v149_v42, %v130_v17 }
 0x10c   :  { %209 = vpow2.f32 %v131_v18 }
 0x116   :  { %v210_v23 = vpop.eup %209 }
 0x117   :  { %v135_v25 = vmul.f32 %v210_v23, %v134_v22 }
 0x119   :  { %v136_v26 = vadd.f32 %v135_v25, %v123_v24 }
 0x11b   :  { %v137_v27 = vand.u32 2147483647, %v136_v26  ;;  %vm145_vm3 = vcmp.ge.f32.partialorder %v136_v26, 0.0 }
 0x11d   :  { %v138_v28 = vmul.f32 -2.0, %v137_v27 }
 0x11f   :  { %v139_v29 = vmul.f32 1.442695, %v138_v28 }
 0x121   :  { %211 = vpow2.f32 %v139_v29 }
 0x12b   :  { %v212_v30 = vpop.eup %211 }
 0x12c   :  { %v142_v31 = vadd.f32 1.0, %v212_v30  ;;  %v154_v32 = vmul.f32 -0.5, %v212_v30  ;;  %v157_v35 = vand.u32 2147483647, %v212_v30  ;;  %v141_v36 = vsub.f32 1.0, %v212_v30 }
 0x12e   :  { %213 = vrcp.f32 %v142_v31  ;;  %v155_v33 = vadd.f32 1.0, %v154_v32  ;;  %vm158_vm1 = vcmp.lt.f32.partialorder %v157_v35, 0.0004427343 }
 0x12f   :  { %215 = vlog2.f32 %v142_v31 }
 0x130   :  { %v156_v41 = vmul.f32 %v212_v30, %v155_v33 }
 0x138   :  { %v214_v37 = vpop.eup %213 }
 0x139   :  { %v216_v38 = vpop.eup %215  ;;  %v144_v39 = vmul.f32 %v214_v37, %v141_v36 }
 0x13a   :  { %v153_v40 = vmul.f32 0.6931472, %v216_v38 }
 0x13b   :  { %v146_v43 = vsub.f32 0.0, %v144_v39 }
 0x13c   :  { %v159_v44 = vsel %vm158_vm1, %v156_v41, %v153_v40 }
 0x13d   :  { %v160_v45 = vadd.f32 %v159_v44, %v137_v27  ;;  %v147_v46 = vsel %vm145_vm3, %v144_v39, %v146_v43 }
 0x13e   :  { %168 = vst.msk [vmem:[#allocation7] sm:$0xff] %vm163_vm2, %v147_v46 }
 0x13f   :  { %v161_v48 = vmul.f32 2.0, %v160_v45 }
 0x141   :  { %v162_v49 = vadd.f32 %v161_v48, %v150_v47 }
 0x143   :  { %v164_v50 = vsel %vm163_vm2, %v162_v49, 0.0 }
 0x144   :  { %165 = vadd.xlane.f32.xlu0 %v164_v50 }
 0x145   :  { %272 = shalt.err (!%p269_p6)
}
 0x146   :  { %s273_s24 = scalar_lea.hbm %s381_s4, 128 }
 0x147   :  { %p274_p7 = scmp.ne.s32.totalorder %s381_s4, %s273_s24  ;;  %p277_p8 = scmp.lt.u32.totalorder %s273_s24, %s381_s4 }
 0x149   :  { %p279_p9 = pnand %p277_p8, %p274_p7 }
 0x14b   :  { %282 = shalt.err (!%p279_p9)
}
 0x14c   :  { %180 = dma.vmem_to_hbm [thread:$0]  %s178_s3, 128, %s381_s4, [#allocation4]   ;;  %vm169_vm4 = vcmask 7168  }
 0x1d1   :  { %v166_v51 = vpop.xlane.xlu0 %165 }
 0x1d2   :  { %v196_v52 = vadd.f32 -18.441864, %v166_v51 }
 0x1d4   :  { %170 = vst.msk [vmem:[%s382_s5] sm:$0xff] %vm169_vm4, %v196_v52 }
 0x1d5   :  { %287 = dma.done.wait [#allocation4], 128  }
 0x1d6   :  { %288 = vsyncadd [#allocation4], 4294967168 }
 0x1d7   :  { %188 = vsyncpa [#allocation3], 1 }
 0x1d8   :  { %189 = vsyncpa [#allocation6], 1 }
 0x1d9   :  { %190 = vsyncpa [#allocation4], 1 }

</bundles_post_ra>
